<compile_context>
chip_gen: v7x
topology: tpu7x:2x2x1
jax: 0.10.0
libtpu: 0.0.40
codegen_flags: <defaults>
</compile_context>

<pallas_src>
import jax
import jax.numpy as jnp
import numpy as np
from jax.experimental import pallas as pl
from jax.experimental.pallas import tpu as pltpu

# ---------------- model config (mirrors GIN.__init__) ----------------
N_LAYERS  = 2          # model_config['n_layers']
HIDDEN    = 32         # model_config['hidden_size']
X_DIM     = 8          # x_dim
NUM_CLASS = 3
N_OUT     = NUM_CLASS
EPS       = 0.0        # GINConv default eps (train_eps=False)
BN_EPS    = 1e-5

N_NODES   = 16
N_GRAPHS  = 2
N_EDGES   = 48

# ---------------- padded (lane / sublane dense) dims ----------------
LANE      = 128
H_PAD     = 128        # HIDDEN padded to one full lane width
X_PAD     = 128        # X_DIM padded
OUT_PAD   = 128        # N_OUT padded
N_WSLICES = 2 * N_LAYERS + 2                        # Wenc, (W1,W2)*L, Wout
BIAS_ROWS = ((2 + 2 * N_LAYERS + 7) // 8) * 8       # derived from N_LAYERS
XB_ROWS   = N_NODES + BIAS_ROWS                     # x rows | bias rows
AP_ROWS   = N_NODES + ((N_GRAPHS + 7) // 8) * 8     # A rows | P rows (padded)
OUT_ROWS  = ((2 * N_GRAPHS + 7) // 8) * 8           # logits rows | emb rows (padded)

assert BIAS_ROWS >= 2 + 2 * N_LAYERS


# ---------------- Pallas kernel ----------------
def gin_kernel(xb_ref, ap_ref, w_ref, out_ref):
    xb = xb_ref[...]                              # [XB_ROWS, 128] f32, one load
    x  = xb[:N_NODES, :]                          # node features (lane-padded)
    B  = xb[N_NODES:, :]                          # bias slab (f32 epilogue)

    ap = ap_ref[...]                              # [AP_ROWS, N_NODES] f32
    A  = ap[:N_NODES, :]                          # A + (1+eps)*I already folded in
    P  = ap[N_NODES:N_NODES + N_GRAPHS, :]        # one-hot global_add_pool matrix

    # node encoder: Linear(x_dim, H)  -- bf16 operands, f32 accumulation
    h = jnp.dot(x.astype(jnp.bfloat16), w_ref[0],
                preferred_element_type=jnp.float32) + B[0:1, :]

    for l in range(N_LAYERS):                     # static unroll, weights VMEM-resident
        # GINConv aggregation + self term: (A + (1+eps)I) @ h   (tiny K=16, kept f32)
        z = jnp.dot(A, h, preferred_element_type=jnp.float32)
        # MLP: Linear(+folded BN) -> ReLU -> Linear ; epilogue stays f32
        z = jnp.dot(z.astype(jnp.bfloat16), w_ref[1 + 2 * l],
                    preferred_element_type=jnp.float32) + B[1 + l:2 + l, :]
        z = jnp.maximum(z, 0.0)
        z = jnp.dot(z.astype(jnp.bfloat16), w_ref[2 + 2 * l],
                    preferred_element_type=jnp.float32) + B[1 + N_LAYERS + l:
                                                            2 + N_LAYERS + l, :]
        # post-conv ReLU; dropout is identity in eval mode
        h = jnp.maximum(z, 0.0)

    # global_add_pool == P @ h
    emb = jnp.dot(P, h, preferred_element_type=jnp.float32)           # [G, 128]
    # fc_out (Wout / bout zero-padded to 128 output lanes)
    logits = jnp.dot(emb.astype(jnp.bfloat16), w_ref[2 * N_LAYERS + 1],
                     preferred_element_type=jnp.float32) + B[1 + 2 * N_LAYERS:
                                                             2 + 2 * N_LAYERS, :]

    # single fused lane-dense output slab: rows 0..G-1 logits, rows G..2G-1 emb
    pad = jnp.zeros((OUT_ROWS - 2 * N_GRAPHS, LANE), jnp.float32)
    out_ref[...] = jnp.concatenate([logits, emb, pad], axis=0)


def gin_forward(xb, ap, w_slab):
    vmem_spec = pl.BlockSpec(memory_space=pltpu.MemorySpace.VMEM)
    out = pl.pallas_call(
        gin_kernel,
        out_shape=jax.ShapeDtypeStruct((OUT_ROWS, LANE), jnp.float32),
        in_specs=[vmem_spec, vmem_spec, vmem_spec],
        out_specs=vmem_spec,
    )(xb, ap, w_slab)
    # slice the fused / padded slab back to the model's true outputs
    logits = out[:N_GRAPHS, :N_OUT]
    emb = out[N_GRAPHS:2 * N_GRAPHS, :HIDDEN]
    return logits, emb


# ---------------- deterministic parameter construction (unpadded, f32) ----------------
def make_params(key):
    ks = jax.random.split(key, 12)
    Wenc = jax.random.normal(ks[0], (X_DIM, HIDDEN), jnp.float32) * 0.1
    benc = jax.random.normal(ks[1], (HIDDEN,), jnp.float32) * 0.1

    W1 = jax.random.normal(ks[2], (N_LAYERS, HIDDEN, HIDDEN), jnp.float32) * 0.1
    b1 = jax.random.normal(ks[3], (N_LAYERS, HIDDEN), jnp.float32) * 0.1
    W2 = jax.random.normal(ks[4], (N_LAYERS, HIDDEN, HIDDEN), jnp.float32) * 0.1
    b2 = jax.random.normal(ks[5], (N_LAYERS, HIDDEN), jnp.float32) * 0.1

    # BatchNorm1d eval-mode with non-trivial running stats (exercises the folding)
    gamma = 1.0 + 0.1 * jax.random.normal(ks[6], (N_LAYERS, HIDDEN), jnp.float32)
    beta  = 0.1 * jax.random.normal(ks[7], (N_LAYERS, HIDDEN), jnp.float32)
    rmean = 0.1 * jax.random.normal(ks[8], (N_LAYERS, HIDDEN), jnp.float32)
    rvar  = 1.0 + 0.1 * jax.random.uniform(ks[9], (N_LAYERS, HIDDEN), jnp.float32)

    Wout = jax.random.normal(ks[10], (HIDDEN, N_OUT), jnp.float32) * 0.1
    bout = jax.random.normal(ks[11], (N_OUT,), jnp.float32) * 0.1
    return (Wenc, benc, W1, b1, gamma, beta, rmean, rvar, W2, b2, Wout, bout)


# ---------------- wrapper-side algebra: fold BN/eps, pack, pad, cast ----------------
def pack_inputs(x, A, P, params):
    (Wenc, benc, W1, b1, gamma, beta, rmean, rvar, W2, b2, Wout, bout) = params

    # fold eval-mode BatchNorm into the first MLP Linear of each layer
    scale = gamma / jnp.sqrt(rvar + BN_EPS)            # [L, H]
    shift = beta - rmean * scale                       # [L, H]
    W1f = W1 * scale[:, None, :]                       # scale output columns
    b1f = b1 * scale + shift

    # single bf16 weight slab: slice0=Wenc, slices 1+2l / 2+2l = W1'/W2, last=Wout
    W_slab = jnp.zeros((N_WSLICES, LANE, LANE), jnp.float32)
    W_slab = W_slab.at[0, :X_DIM, :HIDDEN].set(Wenc)
    for l in range(N_LAYERS):
        W_slab = W_slab.at[1 + 2 * l, :HIDDEN, :HIDDEN].set(W1f[l])
        W_slab = W_slab.at[2 + 2 * l, :HIDDEN, :HIDDEN].set(W2[l])
    W_slab = W_slab.at[2 * N_LAYERS + 1, :HIDDEN, :N_OUT].set(Wout)
    W_slab = W_slab.astype(jnp.bfloat16)

    # f32 xb slab: rows 0..N-1 = lane-padded x, rows N.. = bias slab
    # bias rows: 0=benc, 1..L = b1', 1+L..2L = b2, 1+2L = bout
    xb = jnp.zeros((XB_ROWS, LANE), jnp.float32)
    xb = xb.at[:N_NODES, :X_DIM].set(x)
    xb = xb.at[N_NODES + 0, :HIDDEN].set(benc)
    for l in range(N_LAYERS):
        xb = xb.at[N_NODES + 1 + l, :HIDDEN].set(b1f[l])
        xb = xb.at[N_NODES + 1 + N_LAYERS + l, :HIDDEN].set(b2[l])
    xb = xb.at[N_NODES + 1 + 2 * N_LAYERS, :N_OUT].set(bout)

    # f32 AP slab: rows 0..N-1 = A + (1+eps)I, rows N..N+G-1 = pooling matrix
    A_eps = A + (1.0 + EPS) * jnp.eye(N_NODES, dtype=jnp.float32)
    ap = jnp.zeros((AP_ROWS, N_NODES), jnp.float32)
    ap = ap.at[:N_NODES, :].set(A_eps)
    ap = ap.at[N_NODES:N_NODES + N_GRAPHS, :].set(P)

    return xb, ap, W_slab


# ---------------- pure-JAX f32 reference (unfolded, unpadded) ----------------
def reference_forward(x, A, batch, params):
    (Wenc, benc, W1, b1, gamma, beta, rmean, rvar, W2, b2, Wout, bout) = params
    h = x @ Wenc + benc
    for l in range(N_LAYERS):
        z = (1.0 + EPS) * h + A @ h
        z = z @ W1[l] + b1[l]
        z = (z - rmean[l]) / jnp.sqrt(rvar[l] + BN_EPS) * gamma[l] + beta[l]
        z = jnp.maximum(z, 0.0)
        z = z @ W2[l] + b2[l]
        h = jnp.maximum(z, 0.0)
    P = jax.nn.one_hot(batch, N_GRAPHS, dtype=jnp.float32).T
    emb = P @ h
    logits = emb @ Wout + bout
    return logits, emb


if __name__ == "__main__":
    key = jax.random.PRNGKey(0)
    k_x, k_e, k_p = jax.random.split(key, 3)

    # node features
    x = jax.random.normal(k_x, (N_NODES, X_DIM), jnp.float32)

    # random edge_index (2, E); dense adjacency A[dst, src] += 1
    edge_index = jax.random.randint(k_e, (2, N_EDGES), 0, N_NODES, jnp.int32)
    src, dst = edge_index[0], edge_index[1]
    A = jnp.zeros((N_NODES, N_NODES), jnp.float32).at[dst, src].add(1.0)

    # batch assignment: first half -> graph 0, second half -> graph 1
    batch = jnp.concatenate([jnp.zeros(N_NODES // 2, jnp.int32),
                             jnp.ones(N_NODES - N_NODES // 2, jnp.int32)])
    P = jax.nn.one_hot(batch, N_GRAPHS, dtype=jnp.float32).T      # [G, N]

    params = make_params(k_p)

    # wrapper-side folding / packing / padding / bf16 cast
    xb, ap, W_slab = pack_inputs(x, A, P, params)

    logits, emb = gin_forward(xb, ap, W_slab)
    jax.block_until_ready((logits, emb))

    ref_logits, ref_emb = reference_forward(x, A, batch, params)
    # bf16 weights + bf16 dot operands (f32 accumulation) vs. pure-f32 reference:
    # validate at a bf16-appropriate tolerance.
    np.testing.assert_allclose(np.asarray(logits), np.asarray(ref_logits),
                               rtol=5e-2, atol=5e-2)
    np.testing.assert_allclose(np.asarray(emb), np.asarray(ref_emb),
                               rtol=5e-2, atol=5e-2)

    print("KERNEL_OK")
</pallas_src>

<mosaic_0001>
module attributes {stable_mosaic.version = 11 : i64} {
  func.func @gin_kernel(%arg0: memref<24x128xf32, #tpu.memory_space<vmem>>, %arg1: memref<24x16xf32, #tpu.memory_space<vmem>>, %arg2: memref<6x128x128xbf16, #tpu.memory_space<vmem>>, %arg3: memref<8x128xf32, #tpu.memory_space<vmem>>) attributes {dimension_semantics = [], scalar_prefetch = 0 : i64, scratch_operands = 0 : i64, tpu.core_type = #tpu.core_type<tc>} {
    %c0 = arith.constant 0 : index
    %c0_0 = arith.constant 0 : index
    %0 = vector.load %arg0[%c0, %c0_0] : memref<24x128xf32, #tpu.memory_space<vmem>>, vector<24x128xf32>
    %1 = vector.extract_strided_slice %0 {offsets = [0, 0], sizes = [16, 128], strides = [1, 1]} : vector<24x128xf32> to vector<16x128xf32>
    %2 = vector.extract_strided_slice %0 {offsets = [16, 0], sizes = [8, 128], strides = [1, 1]} : vector<24x128xf32> to vector<8x128xf32>
    %c0_1 = arith.constant 0 : index
    %c0_2 = arith.constant 0 : index
    %3 = vector.load %arg1[%c0_1, %c0_2] : memref<24x16xf32, #tpu.memory_space<vmem>>, vector<24x16xf32>
    %4 = vector.extract_strided_slice %3 {offsets = [0, 0], sizes = [16, 16], strides = [1, 1]} : vector<24x16xf32> to vector<16x16xf32>
    %5 = vector.extract_strided_slice %3 {offsets = [16, 0], sizes = [2, 16], strides = [1, 1]} : vector<24x16xf32> to vector<2x16xf32>
    %6 = arith.truncf %1 : vector<16x128xf32> to vector<16x128xbf16>
    %c0_3 = arith.constant 0 : index
    %c0_4 = arith.constant 0 : index
    %c0_5 = arith.constant 0 : index
    %7 = vector.load %arg2[%c0_3, %c0_4, %c0_5] : memref<6x128x128xbf16, #tpu.memory_space<vmem>>, vector<1x128x128xbf16>
    %8 = vector.shape_cast %7 : vector<1x128x128xbf16> to vector<128x128xbf16>
    %cst = arith.constant dense<0.000000e+00> : vector<16x128xf32>
    %9 = tpu.matmul %6, %8, %cst {dimension_numbers = #tpu.dot_dimension_numbers<[1], [0], [0], [1], [0, 0, 1, 1], [], []>} : vector<16x128xbf16>, vector<128x128xbf16>, vector<16x128xf32> -> vector<16x128xf32>
    %10 = vector.extract_strided_slice %2 {offsets = [0, 0], sizes = [1, 128], strides = [1, 1]} : vector<8x128xf32> to vector<1x128xf32>
    %11 = vector.broadcast %10 : vector<1x128xf32> to vector<16x128xf32>
    %12 = arith.addf %9, %11 : vector<16x128xf32>
    %cst_6 = arith.constant dense<0.000000e+00> : vector<16x128xf32>
    %13 = tpu.matmul %4, %12, %cst_6 {dimension_numbers = #tpu.dot_dimension_numbers<[1], [0], [0], [1], [0, 0, 1, 1], [], []>} : vector<16x16xf32>, vector<16x128xf32>, vector<16x128xf32> -> vector<16x128xf32>
    %14 = arith.truncf %13 : vector<16x128xf32> to vector<16x128xbf16>
    %c1 = arith.constant 1 : index
    %c0_7 = arith.constant 0 : index
    %c0_8 = arith.constant 0 : index
    %15 = vector.load %arg2[%c1, %c0_7, %c0_8] : memref<6x128x128xbf16, #tpu.memory_space<vmem>>, vector<1x128x128xbf16>
    %16 = vector.shape_cast %15 : vector<1x128x128xbf16> to vector<128x128xbf16>
    %cst_9 = arith.constant dense<0.000000e+00> : vector<16x128xf32>
    %17 = tpu.matmul %14, %16, %cst_9 {dimension_numbers = #tpu.dot_dimension_numbers<[1], [0], [0], [1], [0, 0, 1, 1], [], []>} : vector<16x128xbf16>, vector<128x128xbf16>, vector<16x128xf32> -> vector<16x128xf32>
    %18 = vector.extract_strided_slice %2 {offsets = [1, 0], sizes = [1, 128], strides = [1, 1]} : vector<8x128xf32> to vector<1x128xf32>
    %19 = vector.broadcast %18 : vector<1x128xf32> to vector<16x128xf32>
    %20 = arith.addf %17, %19 : vector<16x128xf32>
    %cst_10 = arith.constant 0.000000e+00 : f32
    %21 = vector.broadcast %cst_10 : f32 to vector<16x128xf32>
    %22 = arith.maximumf %20, %21 : vector<16x128xf32>
    %23 = arith.truncf %22 : vector<16x128xf32> to vector<16x128xbf16>
    %c2 = arith.constant 2 : index
    %c0_11 = arith.constant 0 : index
    %c0_12 = arith.constant 0 : index
    %24 = vector.load %arg2[%c2, %c0_11, %c0_12] : memref<6x128x128xbf16, #tpu.memory_space<vmem>>, vector<1x128x128xbf16>
    %25 = vector.shape_cast %24 : vector<1x128x128xbf16> to vector<128x128xbf16>
    %cst_13 = arith.constant dense<0.000000e+00> : vector<16x128xf32>
    %26 = tpu.matmul %23, %25, %cst_13 {dimension_numbers = #tpu.dot_dimension_numbers<[1], [0], [0], [1], [0, 0, 1, 1], [], []>} : vector<16x128xbf16>, vector<128x128xbf16>, vector<16x128xf32> -> vector<16x128xf32>
    %27 = vector.extract_strided_slice %2 {offsets = [3, 0], sizes = [1, 128], strides = [1, 1]} : vector<8x128xf32> to vector<1x128xf32>
    %28 = vector.broadcast %27 : vector<1x128xf32> to vector<16x128xf32>
    %29 = arith.addf %26, %28 : vector<16x128xf32>
    %cst_14 = arith.constant 0.000000e+00 : f32
    %30 = vector.broadcast %cst_14 : f32 to vector<16x128xf32>
    %31 = arith.maximumf %29, %30 : vector<16x128xf32>
    %cst_15 = arith.constant dense<0.000000e+00> : vector<16x128xf32>
    %32 = tpu.matmul %4, %31, %cst_15 {dimension_numbers = #tpu.dot_dimension_numbers<[1], [0], [0], [1], [0, 0, 1, 1], [], []>} : vector<16x16xf32>, vector<16x128xf32>, vector<16x128xf32> -> vector<16x128xf32>
    %33 = arith.truncf %32 : vector<16x128xf32> to vector<16x128xbf16>
    %c3 = arith.constant 3 : index
    %c0_16 = arith.constant 0 : index
    %c0_17 = arith.constant 0 : index
    %34 = vector.load %arg2[%c3, %c0_16, %c0_17] : memref<6x128x128xbf16, #tpu.memory_space<vmem>>, vector<1x128x128xbf16>
    %35 = vector.shape_cast %34 : vector<1x128x128xbf16> to vector<128x128xbf16>
    %cst_18 = arith.constant dense<0.000000e+00> : vector<16x128xf32>
    %36 = tpu.matmul %33, %35, %cst_18 {dimension_numbers = #tpu.dot_dimension_numbers<[1], [0], [0], [1], [0, 0, 1, 1], [], []>} : vector<16x128xbf16>, vector<128x128xbf16>, vector<16x128xf32> -> vector<16x128xf32>
    %37 = vector.extract_strided_slice %2 {offsets = [2, 0], sizes = [1, 128], strides = [1, 1]} : vector<8x128xf32> to vector<1x128xf32>
    %38 = vector.broadcast %37 : vector<1x128xf32> to vector<16x128xf32>
    %39 = arith.addf %36, %38 : vector<16x128xf32>
    %cst_19 = arith.constant 0.000000e+00 : f32
    %40 = vector.broadcast %cst_19 : f32 to vector<16x128xf32>
    %41 = arith.maximumf %39, %40 : vector<16x128xf32>
    %42 = arith.truncf %41 : vector<16x128xf32> to vector<16x128xbf16>
    %c4 = arith.constant 4 : index
    %c0_20 = arith.constant 0 : index
    %c0_21 = arith.constant 0 : index
    %43 = vector.load %arg2[%c4, %c0_20, %c0_21] : memref<6x128x128xbf16, #tpu.memory_space<vmem>>, vector<1x128x128xbf16>
    %44 = vector.shape_cast %43 : vector<1x128x128xbf16> to vector<128x128xbf16>
    %cst_22 = arith.constant dense<0.000000e+00> : vector<16x128xf32>
    %45 = tpu.matmul %42, %44, %cst_22 {dimension_numbers = #tpu.dot_dimension_numbers<[1], [0], [0], [1], [0, 0, 1, 1], [], []>} : vector<16x128xbf16>, vector<128x128xbf16>, vector<16x128xf32> -> vector<16x128xf32>
    %46 = vector.extract_strided_slice %2 {offsets = [4, 0], sizes = [1, 128], strides = [1, 1]} : vector<8x128xf32> to vector<1x128xf32>
    %47 = vector.broadcast %46 : vector<1x128xf32> to vector<16x128xf32>
    %48 = arith.addf %45, %47 : vector<16x128xf32>
    %cst_23 = arith.constant 0.000000e+00 : f32
    %49 = vector.broadcast %cst_23 : f32 to vector<16x128xf32>
    %50 = arith.maximumf %48, %49 : vector<16x128xf32>
    %cst_24 = arith.constant dense<0.000000e+00> : vector<2x128xf32>
    %51 = tpu.matmul %5, %50, %cst_24 {dimension_numbers = #tpu.dot_dimension_numbers<[1], [0], [0], [1], [0, 0, 1, 1], [], []>} : vector<2x16xf32>, vector<16x128xf32>, vector<2x128xf32> -> vector<2x128xf32>
    %52 = arith.truncf %51 : vector<2x128xf32> to vector<2x128xbf16>
    %c5 = arith.constant 5 : index
    %c0_25 = arith.constant 0 : index
    %c0_26 = arith.constant 0 : index
    %53 = vector.load %arg2[%c5, %c0_25, %c0_26] : memref<6x128x128xbf16, #tpu.memory_space<vmem>>, vector<1x128x128xbf16>
    %54 = vector.shape_cast %53 : vector<1x128x128xbf16> to vector<128x128xbf16>
    %cst_27 = arith.constant dense<0.000000e+00> : vector<2x128xf32>
    %55 = tpu.matmul %52, %54, %cst_27 {dimension_numbers = #tpu.dot_dimension_numbers<[1], [0], [0], [1], [0, 0, 1, 1], [], []>} : vector<2x128xbf16>, vector<128x128xbf16>, vector<2x128xf32> -> vector<2x128xf32>
    %56 = vector.extract_strided_slice %2 {offsets = [5, 0], sizes = [1, 128], strides = [1, 1]} : vector<8x128xf32> to vector<1x128xf32>
    %57 = vector.broadcast %56 : vector<1x128xf32> to vector<2x128xf32>
    %58 = arith.addf %55, %57 : vector<2x128xf32>
    %cst_28 = arith.constant 0.000000e+00 : f32
    %59 = vector.broadcast %cst_28 : f32 to vector<4x128xf32>
    %60 = tpu.concatenate %58, %51, %59 in 0 : vector<2x128xf32>, vector<2x128xf32>, vector<4x128xf32> -> vector<8x128xf32>
    %c0_29 = arith.constant 0 : index
    %c0_30 = arith.constant 0 : index
    %61 = vector.load %arg3[%c0_29, %c0_30] : memref<8x128xf32, #tpu.memory_space<vmem>>, vector<8x128xf32>
    tpu.vector_store %arg3[%c0_29, %c0_30], %60 {strides = array<i32>} : memref<8x128xf32, #tpu.memory_space<vmem>>, vector<8x128xf32>,
    return
  }
}

</mosaic_0001>

<bundles_post_ra>
// kernel: tpu_custom_call.1
= control target key start
LH: loop header
LB: loop body
LE: loop exit
PB: predicated region body
PF: predicated region fallthrough
CT: control target
= control target key end

     0   :  { %8 = vsyncpa [#allocation3], 0  ;;  %s1494_s0 = inlined_call_operand.vmem [shape: f32[24,128], index: 0, kind: input, shape index: {}]   ;;  %s1495_s1 = inlined_call_operand.vmem [shape: f32[24,16], index: 1, kind: input, shape index: {}]   ;;  %s1496_s2 = inlined_call_operand.hbm [shape: bf16[6,128,128], index: 2, kind: input, shape index: {}]   ;;  %s1497_s3 = inlined_call_operand.hbm [shape: f32[8,128], index: 3, kind: output, shape index: {}]  }
   0x1   :  { %9 = vsyncpa [#allocation4], 0  ;;  %s1334_s12 = smov [#allocation2]   ;;  %s1286_s16 = scalar_lea.hbm %s1496_s2, 6144 }
   0x2   :  { %s19_s13 = sshll.u32 %s1334_s12, 4  ;;  %p1287_p0 = scmp.ne.s32.totalorder %s1496_s2, %s1286_s16  ;;  %s20_s13 = int_to_ptr.vmem [resolvable:$true] %s19_s13 }
   0x3   :  { %p1290_p1 = scmp.lt.u32.totalorder %s1286_s16, %s1496_s2 }
   0x5   :  { %p1292_p2 = pnand %p1290_p1, %p1287_p0 }
   0x7   :  { %1295 = shalt.err (!%p1292_p2)
}
   0x8   :  { %s1296_s21 = scalar_lea.vmem %s20_s13, 6144  ;;  %p1301_p4 = scmp.lt.s32.totalorder %s20_s13, %s20_s13 }
   0x9   :  { %p1297_p3 = scmp.ne.s32.totalorder %s20_s13, %s1296_s21  ;;  %p1302_p5 = scmp.lt.s32.totalorder %s1296_s21, %s1296_s21 }
   0xb   :  { %p1303_p6 = por %p1302_p5, %p1301_p4 }
   0xd   :  { %p1304_p7 = pnand %p1303_p6, %p1297_p3 }
   0xf   :  { %1307 = shalt.err (!%p1304_p7)
}
  0x10   :  { %s1335_s22 = smov 64   ;;  %s1336_s23 = smov 4  }
  0x11   :  { %25 = dma.hbm_to_vmem [thread:$0]  %s1496_s2, 6144, %s20_s13, [#allocation3], %s1335_s22, %s1335_s22, %s1336_s23  }
  0x12   :  { %1330 = dma.done.wait [#allocation3], 6144  }
  0x13   :  { %1331 = vsyncadd [#allocation3], 4294961152  ;;  %v1337_v0 = vmov 0.0   ;;  %vm1338_vm0 = vmmov 0   ;;  %v1238_v1 = vld [vmem:[#allocation2] sm:$0xff]   ;;  %v1239_v2 = vld [vmem:[#allocation2 + $0x8] sm:$0xff]   ;;  %v53_v13 = vlaneseq }
  0x14   :  { %1079 = vmatprep.subr.bf16.mxu0 %v1337_v0  ;;  %1095 = vmatprep.mubr.msk.bf16.mxu0 %vm1338_vm0, %v1337_v0  ;;  %v1240_v3 = vld [vmem:[#allocation2 + $0x10] sm:$0xff]   ;;  %v1241_v4 = vld [vmem:[#allocation2 + $0x18] sm:$0xff]   ;;  %v1242_v5 = vld [vmem:[#allocation2 + $0x20] sm:$0xff]   ;;  %vm146_vm1 = vcmask 130048   ;;  %vm941_vm2 = vcmask 1041408   ;;  %vm943_vm3 = vcmask 1043456  }
  0x15   :  { %1080 = vmatpush3.bf16.msra.mxu0 %v1238_v1  ;;  %v1243_v6 = vld [vmem:[#allocation2 + $0x28] sm:$0xff]   ;;  %v1244_v7 = vld [vmem:[#allocation2 + $0x30] sm:$0xff]   ;;  %v1245_v8 = vld [vmem:[#allocation2 + $0x38] sm:$0xff]   ;;  %v1399_v14 = vshrl.u32 %v53_v13, 7 }
  0x16   :  { %1081 = vmatprep.subr.bf16.mxu0 %v1337_v0  ;;  %v30_v9 = vld [vmem:[%s1494_s0] sm:$0xff]  ;;  %v31_v10 = vld [vmem:[%s1494_s0 + $0x8] sm:$0xff]  ;;  %v1405_v16 = vld [vmem:[%s1494_s0 + $0x10] sm:$0xff] }
  0x17   :  { %v36_v11 = vpack.c.bf16 %v31_v10, %v30_v9  ;;  %v1395_v12 = vld [vmem:[%s1495_s1] sm:$0xff]  ;;  %v55_v15 = vsub.s32 0, %v1399_v14  ;;  %v1411_v25 = vld [vmem:[%s1495_s1 + $0x8] sm:$0xff]  ;;  %v1248_v28 = vld [vmem:[#allocation2 + $0x50] sm:$0xff]   ;;  %v248_v45 = vsub.s32 1, %v1399_v14  ;;  %v361_v63 = vsub.s32 3, %v1399_v14 }
  0x18   :  { %1103 = vmatprep.mubr.msk.f32.mxu1 %vm146_vm1, %v1395_v12  ;;  %v1246_v26 = vld [vmem:[#allocation2 + $0x40] sm:$0xff]   ;;  %v1247_v27 = vld [vmem:[#allocation2 + $0x48] sm:$0xff]   ;;  %v1249_v29 = vld [vmem:[#allocation2 + $0x58] sm:$0xff]  }
  0x19   :  { %1082 = vmatpush3.bf16.msra.mxu0 %v1239_v2  ;;  %v56_v17 = vrot.slane %v1405_v16, %v55_v15  ;;  %v1250_v30 = vld [vmem:[#allocation2 + $0x60] sm:$0xff]   ;;  %v1251_v31 = vld [vmem:[#allocation2 + $0x68] sm:$0xff]   ;;  %v1252_v32 = vld [vmem:[#allocation2 + $0x70] sm:$0xff]   ;;  %v249_v46 = vrot.slane %v1405_v16, %v248_v45  ;;  %v362_v1 = vrot.slane %v1405_v16, %v361_v63 }
  0x1a   :  { %1083 = vmatprep.subr.bf16.mxu0 %v1337_v0  ;;  %v1253_v33 = vld [vmem:[#allocation2 + $0x78] sm:$0xff]   ;;  %v1254_v34 = vld [vmem:[#allocation2 + $0x80] sm:$0xff]   ;;  %v1255_v35 = vld [vmem:[#allocation2 + $0x88] sm:$0xff]  }
  0x1b   :  { %v1256_v36 = vld [vmem:[#allocation2 + $0x90] sm:$0xff]   ;;  %v1257_v37 = vld [vmem:[#allocation2 + $0x98] sm:$0xff]   ;;  %v1258_v38 = vld [vmem:[#allocation2 + $0xa0] sm:$0xff]  }
  0x1c   :  { %v1259_v39 = vld [vmem:[#allocation2 + $0xa8] sm:$0xff]   ;;  %v1260_v43 = vld [vmem:[#allocation2 + $0xb0] sm:$0xff]   ;;  %v1261_v44 = vld [vmem:[#allocation2 + $0xb8] sm:$0xff]  }
  0x1d   :  { %1084 = vmatpush3.bf16.msra.mxu0 %v1240_v3  ;;  %v1262_v56 = vld [vmem:[#allocation2 + $0xc0] sm:$0xff]   ;;  %v1263_v57 = vld [vmem:[#allocation2 + $0xc8] sm:$0xff]   ;;  %v1264_v58 = vld [vmem:[#allocation2 + $0xd0] sm:$0xff]  }
  0x1e   :  { %1085 = vmatprep.subr.bf16.mxu0 %v1337_v0  ;;  %v1265_v59 = vld [vmem:[#allocation2 + $0xd8] sm:$0xff]   ;;  %v1266_v60 = vld [vmem:[#allocation2 + $0xe0] sm:$0xff]   ;;  %v1267_v61 = vld [vmem:[#allocation2 + $0xe8] sm:$0xff]  }
  0x1f   :  { %v1268_v62 = vld [vmem:[#allocation2 + $0xf0] sm:$0xff]   ;;  %v1271_v13 = vld [vmem:[#allocation2 + $0x108] sm:$0xff]  }
  0x20   :  { %v1272_v15 = vld [vmem:[#allocation2 + $0x110] sm:$0xff]  }
  0x21   :  { %1086 = vmatpush3.bf16.msra.mxu0 %v1241_v4 }
  0x22   :  { %1087 = vmatprep.subr.bf16.mxu0 %v1337_v0 }
  0x25   :  { %1088 = vmatpush3.bf16.msra.mxu0 %v1242_v5 }
  0x26   :  { %1089 = vmatprep.subr.bf16.mxu0 %v1337_v0 }
  0x29   :  { %1090 = vmatpush3.bf16.msra.mxu0 %v1243_v6 }
  0x2a   :  { %1091 = vmatprep.subr.bf16.mxu0 %v1337_v0 }
  0x2d   :  { %1092 = vmatpush3.bf16.msra.mxu0 %v1244_v7 }
  0x2e   :  { %1093 = vmatprep.subr.bf16.mxu0 %v1337_v0 }
  0x31   :  { %1094 = vmatpush3.bf16.msra.mxu0 %v1245_v8 }
  0x32   :  { %1126 = vmatprep.subr.bf16.mxu0 %v1337_v0 }
  0x34   :  { %1096 = vmatmul.mubr.bf16.vlgmr.msra.gmra.mrb[0].mxu0 %v36_v11  ;;  %v1269_v11 = vld [vmem:[#allocation2 + $0xf8] sm:$0xff]  }
  0x35   :  { %1142 = vmatprep.mubr.msk.bf16.mxu0 %vm1338_vm0, %v1337_v0  ;;  %1127 = vmatpush3.bf16.msra.mxu0 %v1254_v34 }
  0x36   :  { %1128 = vmatprep.subr.bf16.mxu0 %v1337_v0 }
  0x39   :  { %1129 = vmatpush3.bf16.msra.mxu0 %v1255_v35 }
  0x3a   :  { %1130 = vmatprep.subr.bf16.mxu0 %v1337_v0 }
  0x3d   :  { %1131 = vmatpush3.bf16.msra.mxu0 %v1256_v36  ;;  %v1339_v36 = vmov 0.0|0.0  }
  0x3e   :  { %1132 = vmatprep.subr.bf16.mxu0 %v1337_v0 }
  0x41   :  { %1133 = vmatpush3.bf16.msra.mxu0 %v1257_v37  ;;  %v662_v37 = vsub.s32 4, %v1399_v14 }
  0x42   :  { %1134 = vmatprep.subr.bf16.mxu0 %v1337_v0 }
  0x45   :  { %1135 = vmatpush3.bf16.msra.mxu0 %v1258_v38  ;;  %v663_v38 = vrot.slane %v1405_v16, %v662_v37 }
  0x46   :  { %1136 = vmatprep.subr.bf16.mxu0 %v1337_v0 }
  0x49   :  { %1137 = vmatpush3.bf16.msra.mxu0 %v1259_v39 }
  0x4a   :  { %1138 = vmatprep.subr.bf16.mxu0 %v1337_v0 }
  0x4d   :  { %1139 = vmatpush3.bf16.msra.mxu0 %v1260_v43 }
  0x4e   :  { %1140 = vmatprep.subr.bf16.mxu0 %v1337_v0 }
  0x51   :  { %1141 = vmatpush3.bf16.msra.mxu0 %v1261_v44 }
 0x107   :  { %v139_v18 = vpop.f32.mrb[0].mxu0 }
 0x108   :  { %v1097_v19 = vpop.f32.mrb[1].mxu0  ;;  %v140_v21 = vadd.f32 %v139_v18, %v56_v17  ;;  %v1274_v18 = vld [vmem:[#allocation2 + $0x120] sm:$0xff]  }
 0x109   :  { %v142_v20 = vpop.f32.mrb[2].mxu0  ;;  %v1275_v19 = vld [vmem:[#allocation2 + $0x128] sm:$0xff]  }
 0x10a   :  { %v143_v22 = vadd.f32 %v142_v20, %v56_v17  ;;  %v1098_v23 = vpop.f32.mrb[3].mxu0  ;;  %v1273_v17 = vld [vmem:[#allocation2 + $0x118] sm:$0xff]  }
 0x10b   :  { %v1276_v23 = vld [vmem:[#allocation2 + $0x130] sm:$0xff]  }
 0x10c   :  { %v1220_v24 = vpack.c.bf16 %v143_v22, %v140_v21 }
 0x10e   :  { %1221 = vmatprep.subr.bf16.mxu1 %v1220_v24 }
 0x10f   :  { %1223 = vmatpush3.bf16.msra.mxu1 %v1220_v24  ;;  %v1277_v24 = vld [vmem:[#allocation2 + $0x138] sm:$0xff]  }
 0x110   :  { %1106 = vmatprep.subr.bf16.mxu1 %v1337_v0 }
 0x112   :  { %1104 = vmatmul.mubr.msk.f32.vlgmr.msra.gmra.mrb[0].mxu1 %vm146_vm1, %v1411_v25 }
 0x113   :  { %1107 = vmatpush3.bf16.msra.mxu1 %v1246_v26  ;;  %1122 = vmatprep.mubr.msk.bf16.mxu1 %vm1338_vm0, %v1337_v0 }
 0x114   :  { %1108 = vmatprep.subr.bf16.mxu1 %v1337_v0 }
 0x117   :  { %1109 = vmatpush3.bf16.msra.mxu1 %v1247_v27 }
 0x118   :  { %1110 = vmatprep.subr.bf16.mxu1 %v1337_v0 }
 0x11b   :  { %1111 = vmatpush3.bf16.msra.mxu1 %v1248_v28 }
 0x11c   :  { %1112 = vmatprep.subr.bf16.mxu1 %v1337_v0 }
 0x11f   :  { %1113 = vmatpush3.bf16.msra.mxu1 %v1249_v29 }
 0x120   :  { %1114 = vmatprep.subr.bf16.mxu1 %v1337_v0 }
 0x123   :  { %1115 = vmatpush3.bf16.msra.mxu1 %v1250_v30 }
 0x124   :  { %1116 = vmatprep.subr.bf16.mxu1 %v1337_v0 }
 0x127   :  { %1117 = vmatpush3.bf16.msra.mxu1 %v1251_v31 }
 0x128   :  { %1118 = vmatprep.subr.bf16.mxu1 %v1337_v0 }
 0x12b   :  { %1119 = vmatpush3.bf16.msra.mxu1 %v1252_v32 }
 0x12c   :  { %1120 = vmatprep.subr.bf16.mxu1 %v1337_v0 }
 0x12f   :  { %1121 = vmatpush3.bf16.msra.mxu1 %v1253_v33 }
 0x130   :  { %1153 = vmatprep.subr.bf16.mxu1 %v1337_v0 }
 0x1e5   :  { %v1105_v40 = vpop.f32.mrb[0].mxu1 }
 0x1e6   :  { %v219_v41 = vpop.f32.mrb[1].mxu1 }
 0x1e7   :  { %v228_v42 = vpack.c.bf16 %v1105_v40, %v219_v41 }
 0x1e9   :  { %1123 = vmatmul.mubr.bf16.vlgmr.msra.gmra.mrb[4].mxu1 %v228_v42 }
 0x1ea   :  { %1169 = vmatprep.mubr.msk.bf16.mxu1 %vm1338_vm0, %v1337_v0  ;;  %1154 = vmatpush3.bf16.msra.mxu1 %v1262_v56  ;;  %v1285_v56 = vld [vmem:[#allocation2 + $0x178] sm:$0xff]  }
 0x1eb   :  { %1155 = vmatprep.subr.bf16.mxu1 %v1337_v0 }
 0x1ee   :  { %1156 = vmatpush3.bf16.msra.mxu1 %v1263_v57 }
 0x1ef   :  { %1157 = vmatprep.subr.bf16.mxu1 %v1337_v0 }
 0x1f2   :  { %1158 = vmatpush3.bf16.msra.mxu1 %v1264_v58 }
 0x1f3   :  { %1159 = vmatprep.subr.bf16.mxu1 %v1337_v0 }
 0x1f6   :  { %1160 = vmatpush3.bf16.msra.mxu1 %v1265_v59 }
 0x1f7   :  { %1161 = vmatprep.subr.bf16.mxu1 %v1337_v0 }
 0x1fa   :  { %1162 = vmatpush3.bf16.msra.mxu1 %v1266_v60  ;;  %v848_v60 = vsub.s32 5, %v1399_v14 }
 0x1fb   :  { %1163 = vmatprep.subr.bf16.mxu1 %v1337_v0 }
 0x1fe   :  { %1164 = vmatpush3.bf16.msra.mxu1 %v1267_v61  ;;  %v849_v61 = vrot.slane %v1405_v16, %v848_v60 }
 0x1ff   :  { %1165 = vmatprep.subr.bf16.mxu1 %v1337_v0 }
 0x202   :  { %1166 = vmatpush3.bf16.msra.mxu1 %v1268_v62 }
 0x203   :  { %1167 = vmatprep.subr.bf16.mxu1 %v1337_v0 }
 0x206   :  { %1168 = vmatpush3.bf16.msra.mxu1 %v1269_v11 }
 0x207   :  { %1228 = vmatprep.subr.bf16.mxu1 %v1339_v36 }
 0x2bc   :  { %v332_v47 = vpop.f32.mrb[4].mxu1 }
 0x2bd   :  { %v333_v48 = vadd.f32 %v332_v47, %v249_v46  ;;  %v1124_v49 = vpop.f32.mrb[5].mxu1 }
 0x2be   :  { %v335_v50 = vpop.f32.mrb[6].mxu1  ;;  %v1278_v49 = vld [vmem:[#allocation2 + $0x140] sm:$0xff]  }
 0x2bf   :  { %v336_v51 = vadd.f32 %v335_v50, %v249_v46  ;;  %v1125_v52 = vpop.f32.mrb[7].mxu1  ;;  %v339_v53 = vmax.f32 %v333_v48, 0.0  ;;  %v35_v48 = vld [vmem:[%s1495_s1 + $0x10] sm:$0xff]  ;;  %v1279_v50 = vld [vmem:[#allocation2 + $0x148] sm:$0xff]   ;;  %s1340_s1 = smov [#allocation5]  }
 0x2c0   :  { %v1281_v52 = vld [vmem:[#allocation2 + $0x158] sm:$0xff]   ;;  %s952_s9 = sshll.u32 %s1340_s1, 4  ;;  %s953_s9 = int_to_ptr.vmem [resolvable:$true] %s952_s9 }
 0x2c1   :  { %v340_v54 = vmax.f32 %v336_v51, 0.0  ;;  %v1280_v51 = vld [vmem:[#allocation2 + $0x150] sm:$0xff]   ;;  %s1308_s10 = scalar_lea.vmem %s953_s9, 128  ;;  %p1313_p9 = scmp.lt.s32.totalorder %s953_s9, %s953_s9 }
 0x2c2   :  { %p1309_p8 = scmp.ne.s32.totalorder %s953_s9, %s1308_s10  ;;  %p1314_p10 = scmp.lt.s32.totalorder %s1308_s10, %s1308_s10 }
 0x2c3   :  { %v341_v55 = vpack.c.bf16 %v340_v54, %v339_v53  ;;  %v1282_v53 = vld [vmem:[#allocation2 + $0x160] sm:$0xff]   ;;  %v1283_v54 = vld [vmem:[#allocation2 + $0x168] sm:$0xff]  }
 0x2c4   :  { %p1315_p11 = por %p1314_p10, %p1313_p9 }
 0x2c5   :  { %1143 = vmatmul.mubr.bf16.vlgmr.msra.gmra.mrb[4].mxu0 %v341_v55  ;;  %v1284_v55 = vld [vmem:[#allocation2 + $0x170] sm:$0xff]  }
 0x2c6   :  { %1150 = vmatprep.mubr.msk.f32.mxu0 %vm146_vm1, %v1395_v12  ;;  %v1270_v12 = vld [vmem:[#allocation2 + $0x100] sm:$0xff]   ;;  %p1316_p12 = pnand %p1315_p11, %p1309_p8 }
 0x398   :  { %v445_v2 = vpop.f32.mrb[4].mxu0 }
 0x399   :  { %v446_v3 = vadd.f32 %v445_v2, %v362_v1  ;;  %v1144_v4 = vpop.f32.mrb[5].mxu0 }
 0x39a   :  { %v448_v5 = vpop.f32.mrb[6].mxu0 }
 0x39b   :  { %v449_v6 = vadd.f32 %v448_v5, %v362_v1  ;;  %v1145_v7 = vpop.f32.mrb[7].mxu0  ;;  %v452_v8 = vmax.f32 %v446_v3, 0.0 }
 0x39d   :  { %v453_v9 = vmax.f32 %v449_v6, 0.0 }
 0x39f   :  { %v1224_v10 = vpack.c.bf16 %v453_v9, %v452_v8 }
 0x3a1   :  { %1225 = vmatprep.subr.bf16.mxu0 %v1224_v10 }
 0x3a2   :  { %1227 = vmatpush3.bf16.msra.mxu0 %v1224_v10 }
 0x3a3   :  { %1173 = vmatprep.subr.bf16.mxu0 %v1337_v0 }
 0x3a5   :  { %1151 = vmatmul.mubr.msk.f32.vlgmr.msra.gmra.mrb[8].mxu0 %vm146_vm1, %v1411_v25  ;;  %v549_v25 = vsub.s32 2, %v1399_v14 }
 0x3a6   :  { %1189 = vmatprep.mubr.msk.bf16.mxu0 %vm1338_vm0, %v1337_v0  ;;  %1174 = vmatpush3.bf16.msra.mxu0 %v1270_v12 }
 0x3a7   :  { %1175 = vmatprep.subr.bf16.mxu0 %v1337_v0  ;;  %v550_v26 = vrot.slane %v1405_v16, %v549_v25 }
 0x3aa   :  { %1176 = vmatpush3.bf16.msra.mxu0 %v1271_v13 }
 0x3ab   :  { %1177 = vmatprep.subr.bf16.mxu0 %v1337_v0 }
 0x3ae   :  { %1178 = vmatpush3.bf16.msra.mxu0 %v1272_v15 }
 0x3af   :  { %1179 = vmatprep.subr.bf16.mxu0 %v1337_v0 }
 0x3b2   :  { %1180 = vmatpush3.bf16.msra.mxu0 %v1273_v17 }
 0x3b3   :  { %1181 = vmatprep.subr.bf16.mxu0 %v1337_v0 }
 0x3b6   :  { %1182 = vmatpush3.bf16.msra.mxu0 %v1274_v18 }
 0x3b7   :  { %1183 = vmatprep.subr.bf16.mxu0 %v1337_v0 }
 0x3ba   :  { %1184 = vmatpush3.bf16.msra.mxu0 %v1275_v19 }
 0x3bb   :  { %1185 = vmatprep.subr.bf16.mxu0 %v1337_v0 }
 0x3be   :  { %1186 = vmatpush3.bf16.msra.mxu0 %v1276_v23 }
 0x3bf   :  { %1187 = vmatprep.subr.bf16.mxu0 %v1337_v0 }
 0x3c2   :  { %1188 = vmatpush3.bf16.msra.mxu0 %v1277_v24 }
 0x478   :  { %v1152_v20 = vpop.f32.mrb[8].mxu0 }
 0x479   :  { %v520_v21 = vpop.f32.mrb[9].mxu0 }
 0x47a   :  { %v529_v22 = vpack.c.bf16 %v1152_v20, %v520_v21 }
 0x47c   :  { %1170 = vmatmul.mubr.bf16.vlgmr.msra.gmra.mrb[8].mxu1 %v529_v22 }
 0x47d   :  { %1197 = vmatprep.mubr.msk.f32.mxu1 %vm1338_vm0, %v1337_v0 }
 0x54f   :  { %v633_v27 = vpop.f32.mrb[8].mxu1 }
 0x550   :  { %v634_v28 = vadd.f32 %v633_v27, %v550_v26  ;;  %v1171_v29 = vpop.f32.mrb[9].mxu1 }
 0x551   :  { %v636_v30 = vpop.f32.mrb[10].mxu1 }
 0x552   :  { %v637_v31 = vadd.f32 %v636_v30, %v550_v26  ;;  %v1172_v32 = vpop.f32.mrb[11].mxu1  ;;  %v640_v33 = vmax.f32 %v634_v28, 0.0 }
 0x554   :  { %v641_v34 = vmax.f32 %v637_v31, 0.0 }
 0x556   :  { %v642_v35 = vpack.c.bf16 %v641_v34, %v640_v33 }
 0x558   :  { %1190 = vmatmul.mubr.bf16.vlgmr.msra.gmra.mrb[12].mxu0 %v642_v35 }
 0x62b   :  { %v746_v39 = vpop.f32.mrb[12].mxu0 }
 0x62c   :  { %v747_v40 = vadd.f32 %v746_v39, %v663_v38  ;;  %v1191_v41 = vpop.f32.mrb[13].mxu0 }
 0x62d   :  { %v749_v42 = vpop.f32.mrb[14].mxu0 }
 0x62e   :  { %v750_v43 = vadd.f32 %v749_v42, %v663_v38  ;;  %v1192_v44 = vpop.f32.mrb[15].mxu0  ;;  %v753_v45 = vmax.f32 %v747_v40, 0.0 }
 0x630   :  { %v754_v46 = vmax.f32 %v750_v43, 0.0 }
 0x632   :  { %v1229_v47 = vpack.c.bf16 %v754_v46, %v753_v45 }
 0x634   :  { %1230 = vmatpush3.bf16.msra.mxu1 %v1229_v47 }
 0x635   :  { %1200 = vmatprep.subr.bf16.mxu1 %v1337_v0 }
 0x637   :  { %1198 = vmatmul.mubr.msk.f32.vlgmr.msra.gmra.mrb[2].mxu1 %vm146_vm1, %v35_v48 }
 0x638   :  { %1201 = vmatpush3.bf16.msra.mxu1 %v1278_v49  ;;  %1216 = vmatprep.mubr.msk.bf16.mxu1 %vm1338_vm0, %v1337_v0 }
 0x639   :  { %1202 = vmatprep.subr.bf16.mxu1 %v1337_v0 }
 0x63c   :  { %1203 = vmatpush3.bf16.msra.mxu1 %v1279_v50 }
 0x63d   :  { %1204 = vmatprep.subr.bf16.mxu1 %v1337_v0 }
 0x640   :  { %1205 = vmatpush3.bf16.msra.mxu1 %v1280_v51 }
 0x641   :  { %1206 = vmatprep.subr.bf16.mxu1 %v1337_v0 }
 0x644   :  { %1207 = vmatpush3.bf16.msra.mxu1 %v1281_v52 }
 0x645   :  { %1208 = vmatprep.subr.bf16.mxu1 %v1337_v0 }
 0x648   :  { %1209 = vmatpush3.bf16.msra.mxu1 %v1282_v53 }
 0x649   :  { %1210 = vmatprep.subr.bf16.mxu1 %v1337_v0 }
 0x64c   :  { %1211 = vmatpush3.bf16.msra.mxu1 %v1283_v54 }
 0x64d   :  { %1212 = vmatprep.subr.bf16.mxu1 %v1337_v0 }
 0x650   :  { %1213 = vmatpush3.bf16.msra.mxu1 %v1284_v55 }
 0x651   :  { %1214 = vmatprep.subr.bf16.mxu1 %v1337_v0 }
 0x654   :  { %1215 = vmatpush3.bf16.msra.mxu1 %v1285_v56 }
 0x70a   :  { %v824_v57 = vpop.f32.mrb[2].mxu1 }
 0x70b   :  { %v828_v58 = vpack.c.bf16 %v824_v57, %v824_v57  ;;  %v1199_v59 = vpop.f32.mrb[3].mxu1  ;;  %v939_v63 = vrot.slane %v824_v57, 6 }
 0x70d   :  { %1217 = vmatmul.mubr.bf16.vlgmr.msra.gmra.mrb[12].mxu1 %v828_v58 }
 0x7e0   :  { %v932_v62 = vpop.f32.mrb[12].mxu1 }
 0x7e1   :  { %v933_v1 = vadd.f32 %v932_v62, %v849_v61  ;;  %v1218_v2 = vpop.f32.mrb[13].mxu1 }
 0x7e2   :  { %v935_v3 = vpop.f32.mrb[14].mxu1 }
 0x7e3   :  { %v1219_v0 = vpop.f32.mrb[15].mxu1  ;;  %v942_v4 = vsel %vm941_vm2, %v933_v1, %v939_v63 }
 0x7e4   :  { %v944_v5 = vsel %vm943_vm3, %v942_v4, 0.0 }
 0x7e5   :  { %945 = vst [vmem:[#allocation5] sm:$0xff] %v944_v5 }
 0x7e6   :  { %1319 = shalt.err (!%p1316_p12)
}
 0x7e7   :  { %s1320_s13 = scalar_lea.hbm %s1497_s3, 128 }
 0x7e8   :  { %p1321_p13 = scmp.ne.s32.totalorder %s1497_s3, %s1320_s13  ;;  %p1324_p0 = scmp.lt.u32.totalorder %s1320_s13, %s1497_s3 }
 0x7ea   :  { %p1326_p1 = pnand %p1324_p0, %p1321_p13 }
 0x7ec   :  { %1329 = shalt.err (!%p1326_p1)
}
 0x7ed   :  { %955 = dma.vmem_to_hbm [thread:$0]  %s953_s9, 128, %s1497_s3, [#allocation4]  }
 0x7ee   :  { %1332 = dma.done.wait [#allocation4], 128  }
 0x7ef   :  { %1333 = vsyncadd [#allocation4], 4294967168 }
 0x7f0   :  { %959 = vsyncpa [#allocation3], 1 }
 0x7f1   :  { %960 = vsyncpa [#allocation4], 1 }

</bundles_post_ra>
